<compile_context>
chip_gen: v5e
topology: v5e:2x2
jax: 0.10.0
libtpu: 0.0.40
codegen_flags: <defaults>
</compile_context>

<pallas_src>
import jax
import jax.numpy as jnp
from jax.experimental import pallas as pl
from jax.experimental.pallas import tpu as pltpu


def _cdiv(a, b):
    return -(-a // b)


def _round_up(a, m):
    return _cdiv(a, m) * m


def _make_kernel(xs, ys, single_pass):
    """Build a Stretch2d kernel specialized on the (Python int) scale factors."""
    if xs > 1:
        def kernel(x_ref, sel_ref, o_ref):
            xv = x_ref[...]
            sel = sel_ref[...]
            if single_pass:
                # bf16 x (bf16 0/1 selector), f32 accumulation: exact, 1 MXU pass.
                wide = jnp.dot(xv, sel, preferred_element_type=jnp.float32)
            else:
                # f32 path: HIGHEST keeps the 0/1-selector "copy" bit-exact.
                wide = jnp.dot(xv.astype(jnp.float32), sel,
                               precision=jax.lax.Precision.HIGHEST,
                               preferred_element_type=jnp.float32)
            res = wide.astype(o_ref.dtype)
            if ys == 1:
                o_ref[...] = res
            else:
                # Height repeat: ys plain stores (sublane broadcast), no MXU.
                for s in range(ys):
                    o_ref[:, s, :] = res
    else:
        def kernel(x_ref, o_ref):
            xv = x_ref[...]
            if ys == 1:
                o_ref[...] = xv
            else:
                for s in range(ys):
                    o_ref[:, s, :] = xv
    return kernel


_VMEM_BUDGET = 24 * 1024 * 1024      # per-step working-set target (fits v7x scoped VMEM)


def _pick_tiles(R, W, xs, ys, itemsize, sel_itemsize, row_tile, col_tile):
    # Rows: second-to-last block dim must be a multiple of 8 (or the full dim).
    if R <= 8:
        tri = R
    else:
        tri = _round_up(_cdiv(R, _cdiv(R, row_tile)), 8)

    # Columns: last block dim must be a multiple of 128 (or the full dim).
    if W <= 128:
        tw_choices = [W]
    elif W <= col_tile:
        # Prefer full width (no padding), then progressively smaller 128-multiples.
        tw_choices = [W] + list(range((W // 128) * 128, 127, -128))
    else:
        nt = _cdiv(W, col_tile)
        tw0 = max(128, _round_up(_cdiv(W, nt), 128))
        tw_choices = list(range(tw0, 127, -128))

    ys_rows = 1 if ys == 1 else _round_up(ys, 8)   # sublane padding of the 3-D out block

    def footprint(tri_, tw_):
        two_ = tw_ * xs
        in_b = 2 * tri_ * tw_ * itemsize                          # double-buffered input
        sel_b = 2 * tw_ * two_ * sel_itemsize if xs > 1 else 0    # constant selector block
        out_b = 2 * tri_ * ys_rows * two_ * itemsize              # double-buffered output
        tmp_b = (tri_ * two_ * 4 + tri_ * tw_ * 4) if xs > 1 else 0
        return in_b + sel_b + out_b + tmp_b

    tw = tw_choices[0]
    for cand in tw_choices:
        tw = cand
        if footprint(tri, cand) <= _VMEM_BUDGET:
            break
    while footprint(tri, tw) > _VMEM_BUDGET and tri > 8:
        tri = max(8, _round_up(tri // 2, 8))
    return tri, tw


def stretch2d_forward(x, x_scale, y_scale, *, row_tile=256, col_tile=512):
    """Nearest-neighbour integer upsampling: (B, C, H, W) -> (B, C, H*ys, W*xs)."""
    B, C, H, W = x.shape
    xs, ys = int(x_scale), int(y_scale)
    if xs == 1 and ys == 1:
        return x

    R = B * C * H
    x2 = x.reshape(R, W)                       # free reshape: rows = B*C*H, cols = W

    single_pass = (x.dtype == jnp.bfloat16)    # 0/1 selector is exact in bf16
    sel_dtype = jnp.bfloat16 if single_pass else jnp.float32
    sel_itemsize = 2 if single_pass else 4
    itemsize = x.dtype.itemsize

    tri, tw = _pick_tiles(R, W, xs, ys, itemsize, sel_itemsize, row_tile, col_tile)
    r_pad = _round_up(R, tri)
    w_pad = _round_up(W, tw)
    if (r_pad, w_pad) != (R, W):
        x2 = jnp.pad(x2, ((0, r_pad - R), (0, w_pad - W)))

    two = tw * xs
    grid = (r_pad // tri, w_pad // tw)
    n_steps = grid[0] * grid[1]

    in_specs = [pl.BlockSpec((tri, tw), lambda i, j: (i, j))]
    operands = [x2]
    sel_bytes = 0
    if xs > 1:
        # 0/1 column-replication matrix, identical for every grid step
        # (constant index_map -> fetched once and held in VMEM).
        col_sel = (jnp.arange(tw, dtype=jnp.int32)[:, None]
                   == jnp.arange(two, dtype=jnp.int32)[None, :] // xs
                   ).astype(sel_dtype)
        in_specs.append(pl.BlockSpec((tw, two), lambda i, j: (0, 0)))
        operands.append(col_sel)
        sel_bytes = tw * two * sel_itemsize

    if ys == 1:
        out_shape = jax.ShapeDtypeStruct((r_pad, w_pad * xs), x.dtype)
        out_spec = pl.BlockSpec((tri, two), lambda i, j: (i, j))
    else:
        # Output viewed as (rows, ys, W*xs): the height repeat is ys plain stores
        # of the same widened block (no MXU, no row-selector matrix).
        out_shape = jax.ShapeDtypeStruct((r_pad, ys, w_pad * xs), x.dtype)
        out_spec = pl.BlockSpec((tri, ys, two), lambda i, j: (i, 0, j))

    # Honest cost estimate: only the width matmul runs on the MXU; the f32 HIGHEST
    # path costs ~6 bf16 passes, the bf16 path 1, and xs == 1 costs none.
    passes = 0 if xs == 1 else (1 if single_pass else 6)
    flops = 2 * tri * tw * two * n_steps * passes
    bytes_accessed = (r_pad * w_pad * itemsize + sel_bytes
                      + r_pad * ys * w_pad * xs * itemsize)

    out = pl.pallas_call(
        _make_kernel(xs, ys, single_pass),
        out_shape=out_shape,
        grid=grid,
        in_specs=in_specs,
        out_specs=out_spec,
        compiler_params=pltpu.CompilerParams(
            dimension_semantics=("parallel", "parallel"),
            vmem_limit_bytes=48 * 1024 * 1024),
        cost_estimate=pl.CostEstimate(flops=flops, transcendentals=0,
                                      bytes_accessed=bytes_accessed),
    )(*operands)

    out2 = out.reshape(r_pad * ys, w_pad * xs)     # free reshape
    out2 = out2[: R * ys, : W * xs]                # drop padding (no-op if unpadded)
    return out2.reshape(B, C, H * ys, W * xs)      # free reshape back to NCHW


def _check(x, x_scale, y_scale, tol=1e-6):
    y = stretch2d_forward(x, x_scale, y_scale)
    y = jax.block_until_ready(y)
    B, C, H, W = x.shape
    assert y.shape == (B, C, H * y_scale, W * x_scale), y.shape
    y_ref = jnp.repeat(jnp.repeat(x, y_scale, axis=2), x_scale, axis=3)
    err = float(jnp.max(jnp.abs(y.astype(jnp.float32) - y_ref.astype(jnp.float32))))
    assert err <= tol, f"mismatch (dtype={x.dtype}, xs={x_scale}, ys={y_scale}): {err}"


if __name__ == "__main__":
    key = jax.random.PRNGKey(0)
    k1, k2, k3, k4 = jax.random.split(key, 4)

    # WaveRNN-typical: Stretch2d(scale, 1) on an f32 mel-like input (ys==1 fast path).
    _check(jax.random.normal(k1, (2, 1, 16, 48), jnp.float32), 5, 1)

    # Wider input: exercises 128-aligned column tiling, padding and a 2-step parallel grid.
    _check(jax.random.normal(k2, (1, 2, 16, 640), jnp.float32), 2, 1)

    # General case: both scales > 1, f32 (exercises the ys>1 sublane-broadcast store path).
    _check(jax.random.normal(k3, (2, 4, 16, 16), jnp.float32), 3, 2)

    # bf16 input: single-pass bf16 selector (exact copy), both scales > 1.
    _check(jax.random.normal(k4, (2, 4, 16, 16), jnp.bfloat16), 3, 2)

    # x_scale == 1: pure copy / row broadcast, no matmul at all.
    _check(jax.random.normal(k1, (2, 4, 16, 16), jnp.float32), 1, 2)

    print("KERNEL_OK")
</pallas_src>

<mosaic_0001>
module attributes {stable_mosaic.version = 11 : i64} {
  func.func @kernel(%arg0: i32, %arg1: i32, %arg2: memref<32x48xf32, #tpu.memory_space<vmem>>, %arg3: memref<48x240xf32, #tpu.memory_space<vmem>>, %arg4: memref<32x240xf32, #tpu.memory_space<vmem>>) attributes {dimension_semantics = [#tpu.dimension_semantics<parallel>, #tpu.dimension_semantics<parallel>], iteration_bounds = array<i64: 1, 1>, scalar_prefetch = 0 : i64, scratch_operands = 0 : i64, tpu.core_type = #tpu.core_type<tc>, window_params = [{transform_indices = @transform_0, window_bounds = array<i64: 32, 48>}, {pipeline_mode = #tpu.pipeline_mode<synchronous>, transform_indices = @transform_1, window_bounds = array<i64: 48, 240>}, {transform_indices = @transform_2, window_bounds = array<i64: 32, 240>}]} {
    %c0 = arith.constant 0 : index
    %c0_0 = arith.constant 0 : index
    %0 = vector.load %arg2[%c0, %c0_0] : memref<32x48xf32, #tpu.memory_space<vmem>>, vector<32x48xf32>
    %c0_1 = arith.constant 0 : index
    %c0_2 = arith.constant 0 : index
    %1 = vector.load %arg3[%c0_1, %c0_2] : memref<48x240xf32, #tpu.memory_space<vmem>>, vector<48x240xf32>
    %cst = arith.constant dense<0.000000e+00> : vector<32x240xf32>
    %2 = tpu.matmul %0, %1, %cst {dimension_numbers = #tpu.dot_dimension_numbers<[1], [0], [0], [1], [0, 0, 1, 1], [], []>, precision = #tpu.contract_precision<fp32>} : vector<32x48xf32>, vector<48x240xf32>, vector<32x240xf32> -> vector<32x240xf32>
    %c0_3 = arith.constant 0 : index
    %c0_4 = arith.constant 0 : index
    %3 = vector.load %arg4[%c0_3, %c0_4] : memref<32x240xf32, #tpu.memory_space<vmem>>, vector<32x240xf32>
    tpu.vector_store %arg4[%c0_3, %c0_4], %2 {strides = array<i32>} : memref<32x240xf32, #tpu.memory_space<vmem>>, vector<32x240xf32>,
    return
  }
  func.func @transform_0(%arg0: i32, %arg1: i32) -> (i32, i32) {
    %c0_i32 = arith.constant 0 : i32
    return %arg0, %arg1 : i32, i32
  }
  func.func @transform_1(%arg0: i32, %arg1: i32) -> (i32, i32) {
    %c0_i32 = arith.constant 0 : i32
    %c0_i32_0 = arith.constant 0 : i32
    %c0_i32_1 = arith.constant 0 : i32
    return %c0_i32, %c0_i32_0 : i32, i32
  }
  func.func @transform_2(%arg0: i32, %arg1: i32) -> (i32, i32) {
    %c0_i32 = arith.constant 0 : i32
    return %arg0, %arg1 : i32, i32
  }
}

</mosaic_0001>

<bundles_post_ra>
// kernel: tpu_custom_call.1
= control target key start
LH: loop header
LB: loop body
LE: loop exit
PB: predicated region body
PF: predicated region fallthrough
CT: control target
= control target key end

     0   :  { %7 = vsyncpa [#allocation3], 0  ;;  %s1111_s0 = inlined_call_operand.hbm [shape: f32[32,48], index: 0, kind: input, shape index: {}]   ;;  %s1112_s1 = inlined_call_operand.hbm [shape: f32[48,240], index: 1, kind: input, shape index: {}]   ;;  %s1113_s2 = inlined_call_operand.hbm [shape: f32[32,240], index: 2, kind: output, shape index: {}]  }
   0x1   :  { %8 = vsyncpa [#allocation6], 0 }
   0x2   :  { %9 = vsyncpa [#allocation4], 0  ;;  %s14_s11 = sshll.u32 %s1111_s0, 4  ;;  %s795_s12 = smov [#allocation2]   ;;  %s15_s11 = int_to_ptr.hbm [resolvable:$true] %s14_s11 }
   0x3   :  { %s16_s13 = sshll.u32 %s795_s12, 4  ;;  %s27_s16 = sshll.u32 %s1112_s1, 4  ;;  %s17_s13 = int_to_ptr.vmem [resolvable:$true] %s16_s13  ;;  %s28_s16 = int_to_ptr.hbm [resolvable:$true] %s27_s16 }
   0x4   :  { %s796_s17 = smov 128   ;;  %s797_s18 = smov 8  }
   0x5   :  { %22 = dma.hbm_to_vmem [thread:$0]  %s15_s11, 512, %s17_s13, [#allocation3], %s796_s17, %s796_s17, %s797_s18  }
   0x6   :  { %s798_s19 = smov [#allocation5]   ;;  %s799_s21 = smov 256  }
   0x7   :  { %s29_s20 = sshll.u32 %s798_s19, 4  ;;  %s800_s22 = smov 16   ;;  %s30_s20 = int_to_ptr.vmem [resolvable:$true] %s29_s20 }
   0x8   :  { %35 = dma.hbm_to_vmem [thread:$0]  %s28_s16, 1536, %s30_s20, [#allocation6], %s799_s21, %s799_s21, %s800_s22  }
   0x9   :  { %789 = dma.done.wait [#allocation3], 512  }
   0xa   :  { %790 = vsyncadd [#allocation3], 4294966784 }
   0xb   :  { %791 = dma.done.wait [#allocation6], 1536  }
   0xc   :  { %792 = vsyncadd [#allocation6], 4294965760  ;;  %v58_v0 = vld [vmem:[#allocation5 + $0x50] sm:$0xff]  ;;  %v56_v1 = vld [vmem:[#allocation5 + $0x40] sm:$0xff]  ;;  %vm60_vm0 = vcmask 392192   ;;  %vm682_vm1 = vcmask 916480  }
   0xd   :  { %v54_v2 = vld [vmem:[#allocation5 + $0x30] sm:$0xff]  ;;  %v826_v3 = vand.u32 4294901760, %v58_v0  ;;  %v828_v4 = vand.u32 4294901760, %v56_v1  ;;  %v52_v6 = vld [vmem:[#allocation5 + $0x20] sm:$0xff]  ;;  %v59_v13 = vld [vmem:[#allocation5 + $0x58] sm:$0xff]  ;;  %s801_s0 = smov [#allocation7]  }
   0xe   :  { %v830_v5 = vand.u32 4294901760, %v54_v2  ;;  %v50_v7 = vld [vmem:[#allocation5 + $0x10] sm:$0xff]  ;;  %v48_v8 = vld [vmem:[#allocation5] sm:$0xff]  ;;  %v832_v9 = vand.u32 4294901760, %v52_v6  ;;  %v45_v22 = vld [vmem:[#allocation2 + $0x8] sm:$0xff]  ;;  %v866_v26 = vand.u32 4294901760, %v59_v13 }
   0xf   :  { %v834_v10 = vand.u32 4294901760, %v50_v7  ;;  %v836_v11 = vand.u32 4294901760, %v48_v8  ;;  %v44_v12 = vld [vmem:[#allocation2] sm:$0xff]  ;;  %84 = vmatpush.msra.mxu0 %v826_v3  ;;  %v840_v14 = vsub.f32 %v58_v0, %v826_v3  ;;  %251 = vmatpush.msra.mxu3 %v826_v3  ;;  %v844_v15 = vsub.f32 %v56_v1, %v828_v4  ;;  %v57_v39 = vld [vmem:[#allocation5 + $0x48] sm:$0xff]  ;;  %v55_v40 = vld [vmem:[#allocation5 + $0x38] sm:$0xff]  ;;  %s694_s1 = sshll.u32 %s801_s0, 4  ;;  %s695_s1 = int_to_ptr.vmem [resolvable:$true] %s694_s1 }
  0x10   :  { %v847_v16 = vsub.f32 %v54_v2, %v830_v5  ;;  %v62_v17 = vsel %vm60_vm0, %v44_v12, 0  ;;  %v851_v18 = vsub.f32 %v52_v6, %v832_v9  ;;  %v65_v34 = vsel %vm60_vm0, %v45_v22, 0  ;;  %v46_v44 = vld [vmem:[#allocation2 + $0x10] sm:$0xff]  ;;  %v53_v45 = vld [vmem:[#allocation5 + $0x28] sm:$0xff]  ;;  %v47_v54 = vld [vmem:[#allocation2 + $0x18] sm:$0xff]  ;;  %s696_s25 = sshll.u32 %s1113_s2, 4  ;;  %s697_s25 = int_to_ptr.hbm [resolvable:$true] %s696_s25 }
  0x11   :  { %v853_v19 = vand.u32 4294901760, %v62_v17  ;;  %v856_v20 = vsub.f32 %v50_v7, %v834_v10  ;;  %v859_v21 = vsub.f32 %v48_v8, %v836_v11  ;;  %86 = vmatpush.msra.mxu0 %v828_v4  ;;  %203 = vmatpush.msra.mxu2 %v840_v14  ;;  %v140_v23 = vand.u32 4294901760, %v840_v14  ;;  %v51_v55 = vld [vmem:[#allocation5 + $0x18] sm:$0xff]  ;;  %v49_v0 = vld [vmem:[#allocation5 + $0x8] sm:$0xff] }
  0x12   :  { %v146_v24 = vand.u32 4294901760, %v844_v15  ;;  %v152_v25 = vand.u32 4294901760, %v847_v16  ;;  %253 = vmatpush.msra.mxu3 %v828_v4  ;;  %v158_v28 = vand.u32 4294901760, %v851_v18  ;;  %v900_v38 = vsub.f32 %v59_v13, %v866_v26 }
  0x13   :  { %v870_v27 = vsub.f32 %v62_v17, %v853_v19  ;;  %v164_v29 = vand.u32 4294901760, %v856_v20  ;;  %v170_v30 = vand.u32 4294901760, %v859_v21  ;;  %88 = vmatpush.msra.mxu0 %v830_v5  ;;  %206 = vmatpush.msra.mxu2 %v844_v15  ;;  %v141_v31 = vsub.f32 %v840_v14, %v140_v23 }
  0x14   :  { %v147_v32 = vsub.f32 %v844_v15, %v146_v24  ;;  %v153_v33 = vsub.f32 %v847_v16, %v152_v25  ;;  %255 = vmatpush.msra.mxu3 %v830_v5  ;;  %v159_v36 = vsub.f32 %v851_v18, %v158_v28  ;;  %v444_v48 = vand.u32 4294901760, %v900_v38 }
  0x15   :  { %v889_v35 = vand.u32 4294901760, %v870_v27  ;;  %v897_v37 = vsub.f32 %v856_v20, %v164_v29  ;;  %90 = vmatpush.msra.mxu0 %v832_v9  ;;  %v142_v41 = vand.u32 4294901760, %v141_v31  ;;  %209 = vmatpush.msra.mxu2 %v847_v16  ;;  %v171_v49 = vsub.f32 %v859_v21, %v170_v30 }
  0x16   :  { %v148_v42 = vand.u32 4294901760, %v147_v32  ;;  %v154_v43 = vand.u32 4294901760, %v153_v33  ;;  %257 = vmatpush.msra.mxu3 %v832_v9  ;;  %v160_v47 = vand.u32 4294901760, %v159_v36  ;;  %v913_v51 = vand.u32 4294901760, %v65_v34 }
  0x17   :  { %v98_v46 = vsub.f32 %v870_v27, %v889_v35  ;;  %92 = vmatpush.msra.mxu0 %v834_v10  ;;  %143 = vmatpush.msra.mxu1 %v142_v41  ;;  %v166_v50 = vand.u32 4294901760, %v897_v37  ;;  %v915_v52 = vand.u32 4294901760, %v57_v39  ;;  %v917_v53 = vand.u32 4294901760, %v55_v40 }
  0x18   :  { %212 = vmatpush.msra.mxu2 %v851_v18  ;;  %259 = vmatpush.msra.mxu3 %v834_v10  ;;  %v445_v57 = vsub.f32 %v900_v38, %v444_v48  ;;  %v68_v58 = vsel %vm60_vm0, %v46_v44, 0  ;;  %v927_v59 = vand.u32 4294901760, %v53_v45  ;;  %v931_v60 = vsub.f32 %v65_v34, %v913_v51 }
  0x19   :  { %v920_v56 = vand.u32 4294901760, %v98_v46  ;;  %94 = vmatpush.msra.mxu0 %v836_v11  ;;  %149 = vmatpush.msra.mxu1 %v148_v42  ;;  %v934_v61 = vsub.f32 %v57_v39, %v915_v52  ;;  %v936_v62 = vand.u32 4294901760, %v68_v58  ;;  %v939_v63 = vsub.f32 %v55_v40, %v917_v53 }
  0x1a   :  { %215 = vmatpush.msra.mxu2 %v856_v20  ;;  %v446_v1 = vand.u32 4294901760, %v445_v57  ;;  %v944_v2 = vsub.f32 %v53_v45, %v927_v59  ;;  %v71_v6 = vsel %vm60_vm0, %v47_v54, 0  ;;  %v947_v7 = vand.u32 4294901760, %v51_v55  ;;  %261 = vmatpush.msra.mxu3 %v836_v11 }
  0x1b   :  { %100 = vmatmul.f32.vlgmr.msra.gmra.mxu0 %v920_v56  ;;  %155 = vmatpush.msra.mxu1 %v154_v43  ;;  %v951_v8 = vand.u32 4294901760, %v931_v60  ;;  %v450_v12 = vand.u32 4294901760, %v934_v61  ;;  %v955_v13 = vsub.f32 %v68_v58, %v936_v62  ;;  %v456_v17 = vand.u32 4294901760, %v939_v63 }
  0x1c   :  { %218 = vmatpush.msra.mxu2 %v859_v21  ;;  %265 = vmatmul.f32.vlgmr.msra.gmra.mxu3 %v889_v35  ;;  %v462_v22 = vand.u32 4294901760, %v944_v2  ;;  %v962_v31 = vsub.f32 %v51_v55, %v947_v7  ;;  %v964_v32 = vand.u32 4294901760, %v49_v0  ;;  %v172_v33 = vand.u32 4294901760, %v171_v49 }
  0x1d   :  { %161 = vmatpush.msra.mxu1 %v160_v47  ;;  %221 = vmatmul.f32.vlgmr.msra.gmra.mxu2 %v870_v27  ;;  %v106_v34 = vsub.f32 %v931_v60, %v951_v8  ;;  %v451_v36 = vsub.f32 %v934_v61, %v450_v12  ;;  %v976_v37 = vand.u32 4294901760, %v955_v13  ;;  %v457_v39 = vsub.f32 %v939_v63, %v456_v17 }
  0x1e   :  { %388 = vmatpush.msrb.mxu2 %v866_v26  ;;  %300 = vmatpush.msrb.mxu0 %v140_v23  ;;  %v981_v40 = vand.u32 4294901760, %v71_v6  ;;  %v984_v41 = vsub.f32 %v49_v0, %v964_v32  ;;  %v468_v14 = vand.u32 4294901760, %v962_v31  ;;  %v463_v23 = vsub.f32 %v944_v2, %v462_v22 }
  0x1f   :  { %167 = vmatpush.msra.mxu1 %v166_v50  ;;  %447 = vmatpush.msrb.mxu3 %v446_v1  ;;  %v986_v42 = vand.u32 4294901760, %v106_v34  ;;  %v452_v43 = vand.u32 4294901760, %v451_v36  ;;  %v114_v45 = vsub.f32 %v955_v13, %v976_v37  ;;  %v458_v46 = vand.u32 4294901760, %v457_v39 }
  0x20   :  { %390 = vmatpush.msrb.mxu2 %v915_v52  ;;  %304 = vmatpush.msrb.mxu0 %v146_v24  ;;  %v474_v44 = vand.u32 4294901760, %v984_v41  ;;  %v1001_v47 = vsub.f32 %v71_v6, %v981_v40  ;;  %v469_v15 = vsub.f32 %v962_v31, %v468_v14  ;;  %v464_v24 = vand.u32 4294901760, %v463_v23 }
  0x21   :  { %173 = vmatpush.msra.mxu1 %v172_v33  ;;  %453 = vmatpush.msrb.mxu3 %v452_v43  ;;  %v115_v49 = vand.u32 4294901760, %v114_v45 }
  0x22   :  { %175 = vmatmul.f32.vlgmr.msra.gmra.mxu1 %v853_v19  ;;  %392 = vmatpush.msrb.mxu2 %v917_v53  ;;  %v1018_v50 = vand.u32 4294901760, %v1001_v47  ;;  %v470_v16 = vand.u32 4294901760, %v469_v15 }
  0x23   :  { %108 = vmatmul.f32.gmra.mxu0 %v986_v42  ;;  %349 = vmatpush.msrb.mxu1 %v826_v3  ;;  %v475_v3 = vsub.f32 %v984_v41, %v474_v44 }
  0x24   :  { %271 = vmatmul.f32.gmra.mxu3 %v951_v8  ;;  %308 = vmatpush.msrb.mxu0 %v152_v25  ;;  %v122_v25 = vsub.f32 %v1001_v47, %v1018_v50 }
  0x25   :  { %226 = vmatmul.f32.gmra.mxu2 %v931_v60  ;;  %351 = vmatpush.msrb.mxu1 %v828_v4  ;;  %v476_v4 = vand.u32 4294901760, %v475_v3 }
  0x26   :  { %459 = vmatpush.msrb.mxu3 %v458_v46  ;;  %394 = vmatpush.msrb.mxu2 %v927_v59 }
  0x27   :  { %353 = vmatpush.msrb.mxu1 %v830_v5  ;;  %312 = vmatpush.msrb.mxu0 %v158_v28  ;;  %v123_v5 = vand.u32 4294901760, %v122_v25 }
  0x28   :  { %465 = vmatpush.msrb.mxu3 %v464_v24  ;;  %396 = vmatpush.msrb.mxu2 %v947_v7 }
  0x29   :  { %355 = vmatpush.msrb.mxu1 %v832_v9  ;;  %316 = vmatpush.msrb.mxu0 %v164_v29 }
  0x2a   :  { %179 = vmatmul.f32.gmra.mxu1 %v913_v51  ;;  %471 = vmatpush.msrb.mxu3 %v470_v16 }
  0x2b   :  { %116 = vmatmul.f32.gmra.mxu0 %v115_v49  ;;  %357 = vmatpush.msrb.mxu1 %v834_v10 }
  0x2c   :  { %277 = vmatmul.f32.gmra.mxu3 %v976_v37  ;;  %320 = vmatpush.msrb.mxu0 %v170_v30 }
  0x2d   :  { %231 = vmatmul.f32.gmra.mxu2 %v955_v13  ;;  %477 = vmatpush.msrb.mxu3 %v476_v4 }
  0x2e   :  { %398 = vmatpush.msrb.mxu2 %v964_v32  ;;  %359 = vmatpush.msrb.mxu1 %v836_v11 }
  0x2f   :  { %507 = vmatpush.msra.mxu0 %v900_v38  ;;  %653 = vmatpush.msra.mxu3 %v866_v26 }
  0x30   :  { %604 = vmatpush.msra.mxu2 %v444_v48  ;;  %555 = vmatpush.msra.mxu1 %v866_v26 }
  0x31   :  { %510 = vmatpush.msra.mxu0 %v934_v61  ;;  %655 = vmatpush.msra.mxu3 %v915_v52 }
  0x32   :  { %608 = vmatpush.msra.mxu2 %v450_v12  ;;  %183 = vmatmul.f32.gmra.mxu1 %v936_v62 }
  0x33   :  { %124 = vmatmul.f32.gmra.mxu0 %v123_v5  ;;  %557 = vmatpush.msra.mxu1 %v915_v52 }
  0x34   :  { %283 = vmatmul.f32.gmra.mxu3 %v1018_v50  ;;  %612 = vmatpush.msra.mxu2 %v456_v17 }
  0x35   :  { %236 = vmatmul.f32.gmra.mxu2 %v1001_v47  ;;  %513 = vmatpush.msra.mxu0 %v939_v63 }
  0x36   :  { %657 = vmatpush.msra.mxu3 %v917_v53  ;;  %559 = vmatpush.msra.mxu1 %v917_v53 }
  0x37   :  { %616 = vmatpush.msra.mxu2 %v462_v22  ;;  %516 = vmatpush.msra.mxu0 %v944_v2 }
  0x38   :  { %659 = vmatpush.msra.mxu3 %v927_v59  ;;  %561 = vmatpush.msra.mxu1 %v927_v59 }
  0x39   :  { %620 = vmatpush.msra.mxu2 %v468_v14  ;;  %519 = vmatpush.msra.mxu0 %v962_v31 }
  0x3a   :  { %187 = vmatmul.f32.gmra.mxu1 %v981_v40  ;;  %661 = vmatpush.msra.mxu3 %v947_v7 }
  0x3b   :  { %322 = vmatmul.f32.vlgmr.msrb.gmra.mxu0 %v853_v19  ;;  %563 = vmatpush.msra.mxu1 %v947_v7 }
  0x3c   :  { %479 = vmatmul.f32.vlgmr.msrb.gmra.mxu3 %v853_v19  ;;  %522 = vmatpush.msra.mxu0 %v984_v41 }
  0x3d   :  { %404 = vmatmul.f32.vlgmr.msrb.gmra.mxu2 %v920_v56  ;;  %663 = vmatpush.msra.mxu3 %v964_v32 }
  0x3e   :  { %624 = vmatpush.msra.mxu2 %v474_v44  ;;  %565 = vmatpush.msra.mxu1 %v964_v32 }
  0x42   :  { %361 = vmatmul.f32.vlgmr.msrb.gmra.mxu1 %v853_v19 }
  0x43   :  { %326 = vmatmul.f32.gmra.mxu0 %v913_v51 }
  0x44   :  { %483 = vmatmul.f32.gmra.mxu3 %v913_v51 }
  0x45   :  { %412 = vmatmul.f32.gmra.mxu2 %v986_v42 }
  0x4a   :  { %365 = vmatmul.f32.gmra.mxu1 %v913_v51 }
  0x4b   :  { %330 = vmatmul.f32.gmra.mxu0 %v936_v62 }
  0x4c   :  { %487 = vmatmul.f32.gmra.mxu3 %v936_v62 }
  0x4d   :  { %420 = vmatmul.f32.gmra.mxu2 %v115_v49 }
  0x52   :  { %369 = vmatmul.f32.gmra.mxu1 %v936_v62 }
  0x53   :  { %334 = vmatmul.f32.gmra.mxu0 %v981_v40 }
  0x54   :  { %491 = vmatmul.f32.gmra.mxu3 %v981_v40 }
  0x55   :  { %428 = vmatmul.f32.gmra.mxu2 %v123_v5 }
  0x5a   :  { %373 = vmatmul.f32.gmra.mxu1 %v981_v40 }
  0x5b   :  { %525 = vmatmul.f32.vlgmr.msra.gmra.mxu0 %v870_v27 }
  0x5c   :  { %665 = vmatmul.f32.vlgmr.msra.gmra.mxu3 %v853_v19 }
  0x5d   :  { %626 = vmatmul.f32.vlgmr.msra.gmra.mxu2 %v853_v19 }
  0x62   :  { %569 = vmatmul.f32.vlgmr.msra.gmra.mxu1 %v889_v35 }
  0x63   :  { %530 = vmatmul.f32.gmra.mxu0 %v931_v60 }
  0x64   :  { %669 = vmatmul.f32.gmra.mxu3 %v913_v51 }
  0x65   :  { %630 = vmatmul.f32.gmra.mxu2 %v913_v51 }
  0x6a   :  { %575 = vmatmul.f32.gmra.mxu1 %v951_v8 }
  0x6b   :  { %535 = vmatmul.f32.gmra.mxu0 %v955_v13 }
  0x6c   :  { %673 = vmatmul.f32.gmra.mxu3 %v936_v62 }
  0x6d   :  { %634 = vmatmul.f32.gmra.mxu2 %v936_v62 }
  0x72   :  { %581 = vmatmul.f32.gmra.mxu1 %v976_v37 }
  0x73   :  { %540 = vmatmul.f32.gmra.mxu0 %v1001_v47 }
  0x74   :  { %677 = vmatmul.f32.gmra.mxu3 %v981_v40 }
  0x75   :  { %638 = vmatmul.f32.gmra.mxu2 %v981_v40 }
  0x7a   :  { %587 = vmatmul.f32.gmra.mxu1 %v1018_v50 }
  0x98   :  { %v101_v9 = vpop.f32.mrf.mxu0 }
  0x9f   :  { %v176_v11 = vpop.f32.mrf.mxu1  ;;  %v266_v19 = vpop.f32.mrf.mxu3 }
  0xa0   :  { %v109_v10 = vpop.f32.mrf.mxu0  ;;  %v222_v18 = vpop.f32.mrf.mxu2  ;;  %v177_v38 = vadd.f32 %v176_v11, %v101_v9 }
  0xa2   :  { %v223_v52 = vadd.f32 %v222_v18, %v177_v38 }
  0xa4   :  { %v267_v55 = vadd.f32 %v266_v19, %v223_v52 }
  0xa7   :  { %v180_v21 = vpop.f32.mrf.mxu1  ;;  %v272_v27 = vpop.f32.mrf.mxu3 }
  0xa8   :  { %v117_v20 = vpop.f32.mrf.mxu0  ;;  %v227_v26 = vpop.f32.mrf.mxu2  ;;  %v181_v56 = vadd.f32 %v180_v21, %v109_v10 }
  0xaa   :  { %v228_v60 = vadd.f32 %v227_v26, %v181_v56 }
  0xac   :  { %v273_v0 = vadd.f32 %v272_v27, %v228_v60 }
  0xaf   :  { %v184_v29 = vpop.f32.mrf.mxu1  ;;  %v278_v35 = vpop.f32.mrf.mxu3 }
  0xb0   :  { %v125_v28 = vpop.f32.mrf.mxu0  ;;  %v232_v30 = vpop.f32.mrf.mxu2  ;;  %v185_v1 = vadd.f32 %v184_v29, %v117_v20 }
  0xb2   :  { %v233_v8 = vadd.f32 %v232_v30, %v185_v1 }
  0xb4   :  { %v279_v22 = vadd.f32 %v278_v35, %v233_v8 }
  0xb7   :  { %v188_v48 = vpop.f32.mrf.mxu1  ;;  %v284_v54 = vpop.f32.mrf.mxu3 }
  0xb8   :  { %v323_v51 = vpop.f32.mrf.mxu0  ;;  %v237_v53 = vpop.f32.mrf.mxu2  ;;  %v189_v31 = vadd.f32 %v188_v48, %v125_v28 }
  0xb9   :  { %v324_v57 = vadd.f32 %v323_v51, %v267_v55 }
  0xba   :  { %v238_v36 = vadd.f32 %v237_v53, %v189_v31 }
  0xbc   :  { %v285_v41 = vadd.f32 %v284_v54, %v238_v36 }
  0xbf   :  { %v362_v59 = vpop.f32.mrf.mxu1  ;;  %v480_v63 = vpop.f32.mrf.mxu3 }
  0xc0   :  { %v327_v58 = vpop.f32.mrf.mxu0  ;;  %v363_v61 = vadd.f32 %v362_v59, %v324_v57  ;;  %v405_v62 = vpop.f32.mrf.mxu2 }
  0xc1   :  { %v328_v2 = vadd.f32 %v327_v58, %v273_v0  ;;  %v481_v46 = vadd.f32 %v480_v63, %v405_v62 }
  0xc2   :  { %681 = vst [vmem:[#allocation7] sm:$0xff] %v363_v61 }
  0xc7   :  { %v366_v7 = vpop.f32.mrf.mxu1  ;;  %v484_v17 = vpop.f32.mrf.mxu3 }
  0xc8   :  { %v331_v6 = vpop.f32.mrf.mxu0  ;;  %v367_v12 = vadd.f32 %v366_v7, %v328_v2  ;;  %v413_v13 = vpop.f32.mrf.mxu2 }
  0xc9   :  { %v332_v32 = vadd.f32 %v331_v6, %v279_v22  ;;  %v485_v4 = vadd.f32 %v484_v17, %v413_v13 }
  0xca   :  { %684 = vst [vmem:[#allocation7 + $0x10] sm:$0xff] %v367_v12 }
  0xcf   :  { %v370_v34 = vpop.f32.mrf.mxu1  ;;  %v488_v40 = vpop.f32.mrf.mxu3 }
  0xd0   :  { %v335_v33 = vpop.f32.mrf.mxu0  ;;  %v371_v37 = vadd.f32 %v370_v34, %v332_v32  ;;  %v421_v39 = vpop.f32.mrf.mxu2 }
  0xd1   :  { %v336_v42 = vadd.f32 %v335_v33, %v285_v41  ;;  %v489_v21 = vadd.f32 %v488_v40, %v421_v39 }
  0xd2   :  { %686 = vst [vmem:[#allocation7 + $0x20] sm:$0xff] %v371_v37 }
  0xd7   :  { %v374_v43 = vpop.f32.mrf.mxu1  ;;  %v492_v45 = vpop.f32.mrf.mxu3 }
  0xd8   :  { %v526_v14 = vpop.f32.mrf.mxu0  ;;  %v375_v23 = vadd.f32 %v374_v43, %v336_v42  ;;  %v429_v44 = vpop.f32.mrf.mxu2 }
  0xd9   :  { %v527_v47 = vadd.f32 %v526_v14, %v481_v46  ;;  %v493_v51 = vadd.f32 %v492_v45, %v429_v44 }
  0xda   :  { %688 = vst [vmem:[#allocation7 + $0x30] sm:$0xff] %v375_v23 }
  0xdf   :  { %v570_v24 = vpop.f32.mrf.mxu1  ;;  %v666_v50 = vpop.f32.mrf.mxu3 }
  0xe0   :  { %v531_v15 = vpop.f32.mrf.mxu0  ;;  %v571_v3 = vadd.f32 %v570_v24, %v527_v47  ;;  %v627_v49 = vpop.f32.mrf.mxu2 }
  0xe1   :  { %v532_v5 = vadd.f32 %v531_v15, %v485_v4 }
  0xe2   :  { %v628_v16 = vadd.f32 %v627_v49, %v571_v3 }
  0xe4   :  { %v667_v25 = vadd.f32 %v666_v50, %v628_v16 }
  0xe6   :  { %683 = vst.msk [vmem:[#allocation7 + $0x8] sm:$0xff] %vm682_vm1, %v667_v25 }
  0xe7   :  { %v576_v9 = vpop.f32.mrf.mxu1  ;;  %v670_v18 = vpop.f32.mrf.mxu3 }
  0xe8   :  { %v577_v10 = vadd.f32 %v576_v9, %v532_v5  ;;  %v631_v11 = vpop.f32.mrf.mxu2  ;;  %v536_v19 = vpop.f32.mrf.mxu0 }
  0xe9   :  { %v537_v27 = vadd.f32 %v536_v19, %v489_v21 }
  0xea   :  { %v632_v20 = vadd.f32 %v631_v11, %v577_v10 }
  0xec   :  { %v671_v26 = vadd.f32 %v670_v18, %v632_v20 }
  0xee   :  { %685 = vst.msk [vmem:[#allocation7 + $0x18] sm:$0xff] %vm682_vm1, %v671_v26 }
  0xef   :  { %v582_v28 = vpop.f32.mrf.mxu1  ;;  %v674_v35 = vpop.f32.mrf.mxu3 }
  0xf0   :  { %v583_v29 = vadd.f32 %v582_v28, %v537_v27  ;;  %v635_v30 = vpop.f32.mrf.mxu2  ;;  %v541_v48 = vpop.f32.mrf.mxu0 }
  0xf1   :  { %v542_v53 = vadd.f32 %v541_v48, %v493_v51 }
  0xf2   :  { %v636_v38 = vadd.f32 %v635_v30, %v583_v29 }
  0xf4   :  { %v675_v52 = vadd.f32 %v674_v35, %v636_v38 }
  0xf6   :  { %687 = vst.msk [vmem:[#allocation7 + $0x28] sm:$0xff] %vm682_vm1, %v675_v52 }
  0xf7   :  { %v588_v54 = vpop.f32.mrf.mxu1  ;;  %v678_v57 = vpop.f32.mrf.mxu3 }
  0xf8   :  { %v589_v55 = vadd.f32 %v588_v54, %v542_v53  ;;  %v639_v56 = vpop.f32.mrf.mxu2 }
  0xfa   :  { %v640_v58 = vadd.f32 %v639_v56, %v589_v55 }
  0xfc   :  { %v679_v59 = vadd.f32 %v678_v57, %v640_v58 }
  0xfe   :  { %689 = vst.msk [vmem:[#allocation7 + $0x38] sm:$0xff] %vm682_vm1, %v679_v59 }
  0xff   :  { %702 = dma.vmem_to_hbm [thread:$0]  %s695_s1, 1024, %s697_s25, [#allocation4], %s799_s21, %s799_s21, %s800_s22  }
 0x100   :  { %793 = dma.done.wait [#allocation4], 1024  }
 0x101   :  { %794 = vsyncadd [#allocation4], 4294966272 }
 0x102   :  { %707 = vsyncpa [#allocation3], 1 }
 0x103   :  { %708 = vsyncpa [#allocation6], 1 }
 0x104   :  { %709 = vsyncpa [#allocation4], 1 }

</bundles_post_ra>
